<compile_context>
chip_gen: v7x
topology: tpu7x:2x2x1
jax: 0.10.0
libtpu: 0.0.40
codegen_flags: <defaults>
</compile_context>

<pallas_src>
import functools

import jax
import jax.numpy as jnp
from jax.experimental import pallas as pl
from jax.experimental.pallas import tpu as pltpu


# ----------------------------- Pallas kernels -----------------------------

def gcn_layer1_kernel(a_ref, x_ref, w1_ref, b1_ref, w2_ref, z_ref, acc_ref):
    """Row tile of  Z = relu((A @ x) * W1 + b1) @ W2_pad.

    a_ref  : [TM, TK]     tile of normalized adjacency
    x_ref  : [1, TK]      node features as a lane-major row vector (IN_F == 1)
    w1_ref : [1, H],  b1_ref : [1, H]        (resident)
    w2_ref : [H, C_PAD]   zero-padded to 128 lanes (resident)
    z_ref  : [TM, C_PAD]  output tile
    acc_ref: [TM, 1]      f32 accumulator for A @ x over the K grid axis
    """
    k = pl.program_id(1)

    @pl.when(k == 0)
    def _():
        acc_ref[...] = jnp.zeros_like(acc_ref)

    # (A @ x) contribution of this K tile: VPU broadcast mul + XLU lane reduce.
    acc_ref[...] += jnp.sum(a_ref[...] * x_ref[...], axis=1, keepdims=True)

    @pl.when(k == pl.num_programs(1) - 1)
    def _():
        # Layer-1 epilogue: rank-1 broadcast (VPU), bias, ReLU.
        h = jnp.maximum(acc_ref[...] * w1_ref[...] + b1_ref[...], 0.0)
        # F.dropout(x, training=False) is the identity in eval mode.
        # Fuse layer-2's feature transform: small [TM,H] @ [H,128] MXU matmul.
        z_ref[...] = jnp.dot(h, w2_ref[...], preferred_element_type=jnp.float32)


def gcn_layer2_kernel(a_ref, z_ref, b2_ref, out_ref, acc_ref, *, num_classes):
    """Row tile of  out = log_softmax(A @ Z + b2)  over the first num_classes lanes.

    a_ref  : [TM, TK]      tile of normalized adjacency
    z_ref  : [TK, C_PAD]   tile of layer-1 output (already W2-transformed)
    b2_ref : [1, C_PAD]    (resident)
    out_ref: [TM, C_PAD]
    acc_ref: [TM, C_PAD]   f32 accumulator over the K grid axis
    """
    k = pl.program_id(1)

    @pl.when(k == 0)
    def _():
        acc_ref[...] = jnp.zeros_like(acc_ref)

    acc_ref[...] += jnp.dot(a_ref[...], z_ref[...],
                            preferred_element_type=jnp.float32)

    @pl.when(k == pl.num_programs(1) - 1)
    def _():
        h2 = acc_ref[...] + b2_ref[...]
        lane = jax.lax.broadcasted_iota(jnp.int32, h2.shape, 1)
        valid = lane < num_classes
        h2 = jnp.where(valid, h2, -1e30)           # mask padded class lanes
        m = jnp.max(h2, axis=1, keepdims=True)
        zc = h2 - m
        lse = jnp.log(jnp.sum(jnp.where(valid, jnp.exp(zc), 0.0),
                              axis=1, keepdims=True))
        out_ref[...] = zc - lse


# ------------------------------ JAX wrapper --------------------------------

def _round_up(v, m):
    return int(pl.cdiv(v, m) * m)


def gcn_forward(a_norm, x, w1, b1, w2, b2, *, tile_m=128, tile_k=128):
    """Full GCN forward. tile_m/tile_k: 128 works on all chips; use 256 on
    v6e/v7x for MXU-native tiles at large N."""
    n = x.shape[0]
    hid = w1.shape[1]
    n_cls = w2.shape[1]

    lanes = 128
    n_pad = _round_up(n, max(tile_m, tile_k))
    c_pad = _round_up(n_cls, lanes)

    # Zero-pad to tile / lane multiples (padded rows/cols of A are zero, so
    # they never contribute to valid rows; padded outputs are sliced off).
    a_p = jnp.zeros((n_pad, n_pad), jnp.float32).at[:n, :n].set(a_norm)
    x_p = jnp.zeros((1, n_pad), jnp.float32).at[:, :n].set(x.reshape(1, n))
    w2_p = jnp.zeros((hid, c_pad), jnp.float32).at[:, :n_cls].set(w2)
    b2_p = jnp.zeros((1, c_pad), jnp.float32).at[:, :n_cls].set(b2)

    grid = (n_pad // tile_m, n_pad // tile_k)
    dims = ("parallel", "arbitrary")   # rows -> megacore, K -> reduction (last)

    # ---- pass 1: Z = relu((A @ x) * W1 + b1) @ W2_pad -------------------
    z = pl.pallas_call(
        gcn_layer1_kernel,
        out_shape=jax.ShapeDtypeStruct((n_pad, c_pad), jnp.float32),
        grid_spec=pltpu.PrefetchScalarGridSpec(
            num_scalar_prefetch=0,
            grid=grid,
            in_specs=[
                pl.BlockSpec((tile_m, tile_k), lambda i, k: (i, k)),  # A tile
                pl.BlockSpec((1, tile_k),      lambda i, k: (0, k)),  # x row
                pl.BlockSpec((1, hid),         lambda i, k: (0, 0)),  # W1 (resident)
                pl.BlockSpec((1, hid),         lambda i, k: (0, 0)),  # b1 (resident)
                pl.BlockSpec((hid, c_pad),     lambda i, k: (0, 0)),  # W2 (resident)
            ],
            out_specs=pl.BlockSpec((tile_m, c_pad), lambda i, k: (i, 0)),
            scratch_shapes=[pltpu.VMEM((tile_m, 1), jnp.float32)],
        ),
        compiler_params=pltpu.CompilerParams(dimension_semantics=dims),
    )(a_p, x_p, w1, b1, w2_p)

    # ---- pass 2: out = log_softmax(A @ Z + b2) ---------------------------
    out_p = pl.pallas_call(
        functools.partial(gcn_layer2_kernel, num_classes=n_cls),
        out_shape=jax.ShapeDtypeStruct((n_pad, c_pad), jnp.float32),
        grid_spec=pltpu.PrefetchScalarGridSpec(
            num_scalar_prefetch=0,
            grid=grid,
            in_specs=[
                pl.BlockSpec((tile_m, tile_k), lambda i, k: (i, k)),  # A tile
                pl.BlockSpec((tile_k, c_pad),  lambda i, k: (k, 0)),  # Z tile
                pl.BlockSpec((1, c_pad),       lambda i, k: (0, 0)),  # b2 (resident)
            ],
            out_specs=pl.BlockSpec((tile_m, c_pad), lambda i, k: (i, 0)),
            scratch_shapes=[pltpu.VMEM((tile_m, c_pad), jnp.float32)],
        ),
        compiler_params=pltpu.CompilerParams(dimension_semantics=dims),
    )(a_p, z, b2_p)

    return out_p[:n, :n_cls]


# ------------------------------ graph setup --------------------------------

def build_normalized_adjacency(edge_index, num_nodes):
    """Dense D^{-1/2}(A + I)D^{-1/2}, following PyG gcn_norm.

    edge_index: [2, E] int32, row 0 = source j, row 1 = target i.
    """
    src = edge_index[0]
    dst = edge_index[1]
    loops = jnp.arange(num_nodes, dtype=edge_index.dtype)
    src = jnp.concatenate([src, loops])
    dst = jnp.concatenate([dst, loops])
    ew = jnp.ones_like(src, dtype=jnp.float32)
    deg = jnp.zeros((num_nodes,), jnp.float32).at[dst].add(ew)
    dinv = jnp.where(deg > 0, jax.lax.rsqrt(deg), 0.0)
    norm = dinv[src] * ew * dinv[dst]
    a = jnp.zeros((num_nodes, num_nodes), jnp.float32).at[dst, src].add(norm)
    return a


def glorot(key, shape):
    fan_in, fan_out = shape[0], shape[1]
    limit = jnp.sqrt(6.0 / (fan_in + fan_out))
    return jax.random.uniform(key, shape, jnp.float32, -limit, limit)


def gcn_reference(a_norm, x, w1, b1, w2, b2):
    """Pure-JAX reference of the PyTorch forward (eval mode)."""
    h = a_norm @ (x @ w1) + b1
    h = jnp.maximum(h, 0.0)
    h2 = a_norm @ (h @ w2) + b2
    return jax.nn.log_softmax(h2, axis=1)


# ------------------------------- main --------------------------------------

if __name__ == "__main__":
    key = jax.random.PRNGKey(0)
    k_x, k_w1, k_w2 = jax.random.split(key, 3)

    N = 16          # number of graph nodes
    IN_F, HID, OUT_F = 1, 16, 10

    # node features [N, 1]
    x = jax.random.normal(k_x, (N, IN_F), jnp.float32)

    # deterministic undirected graph: ring + a few chords, both directions
    ring_src = jnp.arange(N, dtype=jnp.int32)
    ring_dst = (ring_src + 1) % N
    chord_src = jnp.array([0, 2, 4, 6, 8, 10], dtype=jnp.int32)
    chord_dst = jnp.array([8, 11, 13, 1, 3, 5], dtype=jnp.int32)
    src = jnp.concatenate([ring_src, ring_dst, chord_src, chord_dst])
    dst = jnp.concatenate([ring_dst, ring_src, chord_dst, chord_src])
    edge_index = jnp.stack([src, dst], axis=0)   # [2, E], E = 44

    a_norm = build_normalized_adjacency(edge_index, N)

    # parameters (GCNConv: glorot weight, zero bias) — deterministic init
    w1 = glorot(k_w1, (IN_F, HID))
    b1 = jnp.zeros((1, HID), jnp.float32)
    w2 = glorot(k_w2, (HID, OUT_F))
    b2 = jnp.zeros((1, OUT_F), jnp.float32)

    out = gcn_forward(a_norm, x, w1, b1, w2, b2)
    out = jax.block_until_ready(out)

    # correctness: match the pure-JAX reference and log_softmax row sums == 1
    ref = gcn_reference(a_norm, x, w1, b1, w2, b2)
    assert out.shape == (N, OUT_F)
    assert bool(jnp.allclose(out, ref, atol=2e-4, rtol=2e-4))
    row_sums = jnp.exp(out).sum(axis=1)
    assert bool(jnp.all(jnp.abs(row_sums - 1.0) < 1e-4))

    print("KERNEL_OK")
</pallas_src>

<mosaic_0001>
module attributes {stable_mosaic.version = 11 : i64} {
  func.func @gcn_layer1_kernel(%arg0: i32, %arg1: i32, %arg2: memref<128x128xf32, #tpu.memory_space<vmem>>, %arg3: memref<1x128xf32, #tpu.memory_space<vmem>>, %arg4: memref<1x16xf32, #tpu.memory_space<vmem>>, %arg5: memref<1x16xf32, #tpu.memory_space<vmem>>, %arg6: memref<16x128xf32, #tpu.memory_space<vmem>>, %arg7: memref<128x128xf32, #tpu.memory_space<vmem>>, %arg8: memref<128x1xf32, #tpu.memory_space<vmem>>) attributes {dimension_semantics = [#tpu.dimension_semantics<parallel>, #tpu.dimension_semantics<arbitrary>], iteration_bounds = array<i64: 1, 1>, scalar_prefetch = 0 : i64, scratch_operands = 1 : i64, tpu.core_type = #tpu.core_type<tc>, window_params = [{transform_indices = @transform_0, window_bounds = array<i64: 128, 128>}, {transform_indices = @transform_1, window_bounds = array<i64: 1, 128>}, {pipeline_mode = #tpu.pipeline_mode<synchronous>, transform_indices = @transform_2, window_bounds = array<i64: 1, 16>}, {pipeline_mode = #tpu.pipeline_mode<synchronous>, transform_indices = @transform_3, window_bounds = array<i64: 1, 16>}, {pipeline_mode = #tpu.pipeline_mode<synchronous>, transform_indices = @transform_4, window_bounds = array<i64: 16, 128>}, {transform_indices = @transform_5, window_bounds = array<i64: 128, 128>}]} {
    %c0_i32 = arith.constant 0 : i32
    %0 = arith.cmpi eq, %arg1, %c0_i32 : i32
    %1 = arith.extui %0 : i1 to i32
    %c0_i32_0 = arith.constant 0 : i32
    %2 = arith.cmpi ne, %1, %c0_i32_0 : i32
    scf.if %2 {
      %cst_10 = arith.constant 0.000000e+00 : f32
      %15 = vector.broadcast %cst_10 : f32 to vector<128x1xf32>
      %c0_11 = arith.constant 0 : index
      %c0_12 = arith.constant 0 : index
      %16 = vector.load %arg8[%c0_11, %c0_12] : memref<128x1xf32, #tpu.memory_space<vmem>>, vector<128x1xf32>
      tpu.vector_store %arg8[%c0_11, %c0_12], %15 {strides = array<i32>} : memref<128x1xf32, #tpu.memory_space<vmem>>, vector<128x1xf32>,
    } else {
    }
    %c0 = arith.constant 0 : index
    %c0_1 = arith.constant 0 : index
    %3 = vector.load %arg8[%c0, %c0_1] : memref<128x1xf32, #tpu.memory_space<vmem>>, vector<128x1xf32>
    %c0_2 = arith.constant 0 : index
    %c0_3 = arith.constant 0 : index
    %4 = vector.load %arg2[%c0_2, %c0_3] : memref<128x128xf32, #tpu.memory_space<vmem>>, vector<128x128xf32>
    %c0_4 = arith.constant 0 : index
    %c0_5 = arith.constant 0 : index
    %5 = vector.load %arg3[%c0_4, %c0_5] : memref<1x128xf32, #tpu.memory_space<vmem>>, vector<1x128xf32>
    %6 = vector.broadcast %5 : vector<1x128xf32> to vector<128x128xf32>
    %7 = arith.mulf %4, %6 : vector<128x128xf32>
    %cst = arith.constant dense<0.000000e+00> : vector<128xf32>
    %8 = vector.multi_reduction <add>, %7, %cst [1] : vector<128x128xf32> to vector<128xf32>
    %9 = vector.shape_cast %8 : vector<128xf32> to vector<128x1xf32>
    %10 = arith.addf %3, %9 : vector<128x1xf32>
    %c0_6 = arith.constant 0 : index
    %c0_7 = arith.constant 0 : index
    %11 = vector.load %arg8[%c0_6, %c0_7] : memref<128x1xf32, #tpu.memory_space<vmem>>, vector<128x1xf32>
    tpu.vector_store %arg8[%c0_6, %c0_7], %10 {strides = array<i32>} : memref<128x1xf32, #tpu.memory_space<vmem>>, vector<128x1xf32>,
    %c0_i32_8 = arith.constant 0 : i32
    %12 = arith.cmpi eq, %arg1, %c0_i32_8 : i32
    %13 = arith.extui %12 : i1 to i32
    %c0_i32_9 = arith.constant 0 : i32
    %14 = arith.cmpi ne, %13, %c0_i32_9 : i32
    scf.if %14 {
      %c0_10 = arith.constant 0 : index
      %c0_11 = arith.constant 0 : index
      %15 = vector.load %arg8[%c0_10, %c0_11] : memref<128x1xf32, #tpu.memory_space<vmem>>, vector<128x1xf32>
      %c0_12 = arith.constant 0 : index
      %c0_13 = arith.constant 0 : index
      %16 = vector.load %arg4[%c0_12, %c0_13] : memref<1x16xf32, #tpu.memory_space<vmem>>, vector<1x16xf32>
      %17 = vector.broadcast %15 : vector<128x1xf32> to vector<128x16xf32>
      %18 = vector.broadcast %16 : vector<1x16xf32> to vector<128x16xf32>
      %19 = arith.mulf %17, %18 : vector<128x16xf32>
      %c0_14 = arith.constant 0 : index
      %c0_15 = arith.constant 0 : index
      %20 = vector.load %arg5[%c0_14, %c0_15] : memref<1x16xf32, #tpu.memory_space<vmem>>, vector<1x16xf32>
      %21 = vector.broadcast %20 : vector<1x16xf32> to vector<128x16xf32>
      %22 = arith.addf %19, %21 : vector<128x16xf32>
      %cst_16 = arith.constant 0.000000e+00 : f32
      %23 = vector.broadcast %cst_16 : f32 to vector<128x16xf32>
      %24 = arith.maximumf %22, %23 : vector<128x16xf32>
      %c0_17 = arith.constant 0 : index
      %c0_18 = arith.constant 0 : index
      %25 = vector.load %arg6[%c0_17, %c0_18] : memref<16x128xf32, #tpu.memory_space<vmem>>, vector<16x128xf32>
      %cst_19 = arith.constant dense<0.000000e+00> : vector<128x128xf32>
      %26 = tpu.matmul %24, %25, %cst_19 {dimension_numbers = #tpu.dot_dimension_numbers<[1], [0], [0], [1], [0, 0, 1, 1], [], []>} : vector<128x16xf32>, vector<16x128xf32>, vector<128x128xf32> -> vector<128x128xf32>
      %c0_20 = arith.constant 0 : index
      %c0_21 = arith.constant 0 : index
      %27 = vector.load %arg7[%c0_20, %c0_21] : memref<128x128xf32, #tpu.memory_space<vmem>>, vector<128x128xf32>
      tpu.vector_store %arg7[%c0_20, %c0_21], %26 {strides = array<i32>} : memref<128x128xf32, #tpu.memory_space<vmem>>, vector<128x128xf32>,
    } else {
    }
    return
  }
  func.func @transform_0(%arg0: i32, %arg1: i32) -> (i32, i32) {
    %c0_i32 = arith.constant 0 : i32
    return %arg0, %arg1 : i32, i32
  }
  func.func @transform_1(%arg0: i32, %arg1: i32) -> (i32, i32) {
    %c0_i32 = arith.constant 0 : i32
    %c0_i32_0 = arith.constant 0 : i32
    return %c0_i32, %arg1 : i32, i32
  }
  func.func @transform_2(%arg0: i32, %arg1: i32) -> (i32, i32) {
    %c0_i32 = arith.constant 0 : i32
    %c0_i32_0 = arith.constant 0 : i32
    %c0_i32_1 = arith.constant 0 : i32
    return %c0_i32, %c0_i32_0 : i32, i32
  }
  func.func @transform_3(%arg0: i32, %arg1: i32) -> (i32, i32) {
    %c0_i32 = arith.constant 0 : i32
    %c0_i32_0 = arith.constant 0 : i32
    %c0_i32_1 = arith.constant 0 : i32
    return %c0_i32, %c0_i32_0 : i32, i32
  }
  func.func @transform_4(%arg0: i32, %arg1: i32) -> (i32, i32) {
    %c0_i32 = arith.constant 0 : i32
    %c0_i32_0 = arith.constant 0 : i32
    %c0_i32_1 = arith.constant 0 : i32
    return %c0_i32, %c0_i32_0 : i32, i32
  }
  func.func @transform_5(%arg0: i32, %arg1: i32) -> (i32, i32) {
    %c0_i32 = arith.constant 0 : i32
    %c0_i32_0 = arith.constant 0 : i32
    return %arg0, %c0_i32 : i32, i32
  }
}

</mosaic_0001>

<bundles_post_ra>
// kernel: tpu_custom_call.1
= control target key start
LH: loop header
LB: loop body
LE: loop exit
PB: predicated region body
PF: predicated region fallthrough
CT: control target
= control target key end

     0   :  { %10 = vsyncpa [#allocation4], 0  ;;  %s908_s0 = inlined_call_operand.hbm [shape: f32[128,128], index: 0, kind: input, shape index: {}]   ;;  %s909_s1 = inlined_call_operand.vmem [shape: f32[1,128], index: 1, kind: input, shape index: {}]   ;;  %s910_s2 = inlined_call_operand.vmem [shape: f32[1,16], index: 2, kind: input, shape index: {}]   ;;  %s911_s3 = inlined_call_operand.vmem [shape: f32[1,16], index: 3, kind: input, shape index: {}]   ;;  %s912_s4 = inlined_call_operand.hbm [shape: f32[16,128], index: 4, kind: input, shape index: {}]   ;;  %s913_s5 = inlined_call_operand.hbm [shape: f32[128,128], index: 5, kind: output, shape index: {}]  }
   0x1   :  { %11 = vsyncpa [#allocation7], 0 }
   0x2   :  { %12 = vsyncpa [#allocation5], 0  ;;  %s733_s18 = smov [#allocation3]   ;;  %s661_s22 = scalar_lea.hbm %s908_s0, 2048 }
   0x3   :  { %s18_s19 = sshll.u32 %s733_s18, 4  ;;  %p662_p0 = scmp.ne.s32.totalorder %s908_s0, %s661_s22  ;;  %s19_s19 = int_to_ptr.vmem [resolvable:$true] %s18_s19 }
   0x4   :  { %p665_p1 = scmp.lt.u32.totalorder %s661_s22, %s908_s0 }
   0x6   :  { %p667_p2 = pnand %p665_p1, %p662_p0 }
   0x8   :  { %670 = shalt.err (!%p667_p2)
}
   0x9   :  { %s671_s27 = scalar_lea.vmem %s19_s19, 2048  ;;  %p676_p4 = scmp.lt.s32.totalorder %s19_s19, %s19_s19 }
   0xa   :  { %p672_p3 = scmp.ne.s32.totalorder %s19_s19, %s671_s27  ;;  %p677_p5 = scmp.lt.s32.totalorder %s671_s27, %s671_s27 }
   0xc   :  { %p678_p6 = por %p677_p5, %p676_p4 }
   0xe   :  { %p679_p7 = pnand %p678_p6, %p672_p3 }
  0x10   :  { %682 = shalt.err (!%p679_p7)
}
  0x11   :  { %s734_s28 = smov 128   ;;  %s735_s29 = smov 8  }
  0x12   :  { %24 = dma.hbm_to_vmem [thread:$0]  %s908_s0, 2048, %s19_s19, [#allocation4], %s734_s28, %s734_s28, %s735_s29  }
  0x13   :  { %s736_s7 = smov [#allocation6]   ;;  %s683_s11 = scalar_lea.hbm %s912_s4, 256 }
  0x14   :  { %s36_s8 = sshll.u32 %s736_s7, 4  ;;  %p684_p8 = scmp.ne.s32.totalorder %s912_s4, %s683_s11  ;;  %s37_s8 = int_to_ptr.vmem [resolvable:$true] %s36_s8 }
  0x15   :  { %p687_p9 = scmp.lt.u32.totalorder %s683_s11, %s912_s4 }
  0x17   :  { %p689_p10 = pnand %p687_p9, %p684_p8 }
  0x19   :  { %692 = shalt.err (!%p689_p10)
}
  0x1a   :  { %s693_s16 = scalar_lea.vmem %s37_s8, 256  ;;  %p698_p12 = scmp.lt.s32.totalorder %s37_s8, %s37_s8 }
  0x1b   :  { %p694_p11 = scmp.ne.s32.totalorder %s37_s8, %s693_s16  ;;  %p699_p13 = scmp.lt.s32.totalorder %s693_s16, %s693_s16 }
  0x1d   :  { %p700_p0 = por %p699_p13, %p698_p12 }
  0x1f   :  { %p701_p1 = pnand %p700_p0, %p694_p11 }
  0x21   :  { %704 = shalt.err (!%p701_p1)
}
  0x22   :  { %42 = dma.hbm_to_vmem [thread:$0]  %s912_s4, 256, %s37_s8, [#allocation7], %s734_s28, %s734_s28, %s735_s29  }
  0x23   :  { %727 = dma.done.wait [#allocation4], 2048  }
  0x24   :  { %728 = vsyncadd [#allocation4], 4294965248 }
  0x25   :  { %729 = dma.done.wait [#allocation7], 256  }
  0x26   :  { %730 = vsyncadd [#allocation7], 4294967040  ;;  %vm53_vm0 = vcmask 7168   ;;  %v737_v0 = vmov 0.0   ;;  %v87_v1 = vld [vmem:[#allocation3 + $0x8] sm:$0xff]  ;;  %v86_v3 = vld [vmem:[#allocation3] sm:$0xff] }
  0x27   :  { %55 = vst.msk [vmem:[#allocation2 + $0x8] sm:$0xff] %vm53_vm0, %v737_v0  ;;  %54 = vst.msk [vmem:[#allocation2] sm:$0xff] %vm53_vm0, %v737_v0  ;;  %v581_v2 = vld [vmem:[%s909_s1] ss:$0 sm:$0xff]  ;;  %v95_v6 = vld [vmem:[#allocation3 + $0x48] sm:$0xff]  ;;  %v738_v32 = vmov 0  }
  0x28   :  { %56 = vst.msk [vmem:[#allocation2 + $0x10] sm:$0xff] %vm53_vm0, %v737_v0  ;;  %57 = vst.msk [vmem:[#allocation2 + $0x18] sm:$0xff] %vm53_vm0, %v737_v0  ;;  %v110_v4 = vmul.f32 %v581_v2, %v87_v1  ;;  %v109_v5 = vmul.f32 %v581_v2, %v86_v3  ;;  %v94_v7 = vld [vmem:[#allocation3 + $0x40] sm:$0xff]  ;;  %v118_v8 = vmul.f32 %v581_v2, %v95_v6  ;;  %v96_v10 = vld [vmem:[#allocation3 + $0x50] sm:$0xff]  ;;  %659 = vset.pattern.permute.xlu0 %v738_v32  ;;  %vm353_vm1 = vcmask 130048  }
  0x29   :  { %58 = vst.msk [vmem:[#allocation2 + $0x20] sm:$0xff] %vm53_vm0, %v737_v0  ;;  %59 = vst.msk [vmem:[#allocation2 + $0x28] sm:$0xff] %vm53_vm0, %v737_v0  ;;  %v117_v9 = vmul.f32 %v581_v2, %v94_v7  ;;  %v88_v11 = vld [vmem:[#allocation3 + $0x10] sm:$0xff]  ;;  %v119_v12 = vmul.f32 %v581_v2, %v96_v10  ;;  %v97_v14 = vld [vmem:[#allocation3 + $0x58] sm:$0xff]  ;;  %660 = vset.pattern.permute.xlu1 %v738_v32 }
  0x2a   :  { %60 = vst.msk [vmem:[#allocation2 + $0x30] sm:$0xff] %vm53_vm0, %v737_v0  ;;  %61 = vst.msk [vmem:[#allocation2 + $0x38] sm:$0xff] %vm53_vm0, %v737_v0  ;;  %127 = vadd.xlane.f32.xlu1 %v110_v4  ;;  %125 = vadd.xlane.f32.xlu0 %v109_v5  ;;  %v111_v13 = vmul.f32 %v581_v2, %v88_v11  ;;  %v89_v15 = vld [vmem:[#allocation3 + $0x18] sm:$0xff]  ;;  %v120_v16 = vmul.f32 %v581_v2, %v97_v14  ;;  %v98_v18 = vld [vmem:[#allocation3 + $0x60] sm:$0xff] }
  0x2b   :  { %62 = vst.msk [vmem:[#allocation2 + $0x40] sm:$0xff] %vm53_vm0, %v737_v0  ;;  %63 = vst.msk [vmem:[#allocation2 + $0x48] sm:$0xff] %vm53_vm0, %v737_v0  ;;  %v112_v17 = vmul.f32 %v581_v2, %v89_v15  ;;  %v90_v19 = vld [vmem:[#allocation3 + $0x20] sm:$0xff]  ;;  %v121_v20 = vmul.f32 %v581_v2, %v98_v18  ;;  %v99_v22 = vld [vmem:[#allocation3 + $0x68] sm:$0xff] }
  0x2c   :  { %64 = vst.msk [vmem:[#allocation2 + $0x50] sm:$0xff] %vm53_vm0, %v737_v0  ;;  %65 = vst.msk [vmem:[#allocation2 + $0x58] sm:$0xff] %vm53_vm0, %v737_v0  ;;  %v113_v21 = vmul.f32 %v581_v2, %v90_v19  ;;  %v91_v23 = vld [vmem:[#allocation3 + $0x28] sm:$0xff]  ;;  %v122_v24 = vmul.f32 %v581_v2, %v99_v22  ;;  %v100_v26 = vld [vmem:[#allocation3 + $0x70] sm:$0xff] }
  0x2d   :  { %66 = vst.msk [vmem:[#allocation2 + $0x60] sm:$0xff] %vm53_vm0, %v737_v0  ;;  %67 = vst.msk [vmem:[#allocation2 + $0x68] sm:$0xff] %vm53_vm0, %v737_v0  ;;  %v114_v25 = vmul.f32 %v581_v2, %v91_v23  ;;  %v92_v27 = vld [vmem:[#allocation3 + $0x30] sm:$0xff]  ;;  %v123_v28 = vmul.f32 %v581_v2, %v100_v26  ;;  %v101_v30 = vld [vmem:[#allocation3 + $0x78] sm:$0xff] }
  0x2e   :  { %68 = vst.msk [vmem:[#allocation2 + $0x70] sm:$0xff] %vm53_vm0, %v737_v0  ;;  %69 = vst.msk [vmem:[#allocation2 + $0x78] sm:$0xff] %vm53_vm0, %v737_v0  ;;  %143 = vadd.xlane.f32.xlu1 %v118_v8  ;;  %141 = vadd.xlane.f32.xlu0 %v117_v9  ;;  %v115_v29 = vmul.f32 %v581_v2, %v92_v27  ;;  %v93_v31 = vld [vmem:[#allocation3 + $0x38] sm:$0xff]  ;;  %v124_v33 = vmul.f32 %v581_v2, %v101_v30  ;;  %v71_v35 = vld [vmem:[#allocation2 + $0x8] sm:$0xff] }
  0x2f   :  { %v116_v34 = vmul.f32 %v581_v2, %v93_v31  ;;  %v70_v36 = vld [vmem:[#allocation2] sm:$0xff]  ;;  %v72_v48 = vld [vmem:[#allocation2 + $0x10] sm:$0xff]  ;;  %v73_v55 = vld [vmem:[#allocation2 + $0x18] sm:$0xff] }
  0x30   :  { %v74_v62 = vld [vmem:[#allocation2 + $0x20] sm:$0xff]  ;;  %v75_v5 = vld [vmem:[#allocation2 + $0x28] sm:$0xff] }
  0x31   :  { %v351_v6 = vld [vmem:[#allocation6] sm:$0xff]  ;;  %v352_v7 = vld [vmem:[#allocation6 + $0x8] sm:$0xff]  ;;  %v76_v15 = vld [vmem:[#allocation2 + $0x30] sm:$0xff] }
  0x32   :  { %145 = vadd.xlane.f32.xlu1 %v119_v12  ;;  %129 = vadd.xlane.f32.xlu0 %v111_v13  ;;  %v79_v41 = vld [vmem:[#allocation2 + $0x48] sm:$0xff]  ;;  %v78_v42 = vld [vmem:[#allocation2 + $0x40] sm:$0xff]  ;;  %v646_v11 = vpack.c.bf16 %v352_v7, %v351_v6  ;;  %v77_v23 = vld [vmem:[#allocation2 + $0x38] sm:$0xff] }
  0x33   :  { %v80_v47 = vld [vmem:[#allocation2 + $0x50] sm:$0xff]  ;;  %v81_v54 = vld [vmem:[#allocation2 + $0x58] sm:$0xff] }
  0x34   :  { %v82_v61 = vld [vmem:[#allocation2 + $0x60] sm:$0xff]  ;;  %v83_v4 = vld [vmem:[#allocation2 + $0x68] sm:$0xff]  ;;  %647 = vmatprep.subr.bf16.mxu0 %v646_v11  ;;  %650 = vmatprep.subr.bf16.mxu1 %v646_v11 }
  0x35   :  { %v84_v14 = vld [vmem:[#allocation2 + $0x70] sm:$0xff]  ;;  %649 = vmatpush3.bf16.msra.mxu0 %v646_v11  ;;  %651 = vmatpush3.bf16.msra.mxu1 %v646_v11  ;;  %v85_v22 = vld [vmem:[#allocation2 + $0x78] sm:$0xff] }
  0x36   :  { %147 = vadd.xlane.f32.xlu1 %v120_v16  ;;  %131 = vadd.xlane.f32.xlu0 %v112_v17 }
  0x3a   :  { %149 = vadd.xlane.f32.xlu1 %v121_v20  ;;  %133 = vadd.xlane.f32.xlu0 %v113_v21 }
  0x3e   :  { %151 = vadd.xlane.f32.xlu1 %v122_v24  ;;  %135 = vadd.xlane.f32.xlu0 %v114_v25 }
  0x42   :  { %153 = vadd.xlane.f32.xlu1 %v123_v28  ;;  %137 = vadd.xlane.f32.xlu0 %v115_v29 }
  0x46   :  { %155 = vadd.xlane.f32.xlu1 %v124_v33  ;;  %139 = vadd.xlane.f32.xlu0 %v116_v34 }
  0xb7   :  { %v128_v37 = vpop.xlane.xlu1 %127  ;;  %v126_v38 = vpop.xlane.xlu0 %125 }
  0xb8   :  { %v158_v39 = vadd.f32 %v128_v37, %v71_v35  ;;  %v157_v40 = vadd.f32 %v126_v38, %v70_v36  ;;  %v838_v38 = vld [vmem:[%s910_s2] ss:$0 sm:$0xff]  ;;  %s739_s2 = smov [#allocation8]  }
  0xba   :  { %175 = vst.msk [vmem:[#allocation2 + $0x8] sm:$0xff] %vm53_vm0, %v158_v39  ;;  %174 = vst.msk [vmem:[#allocation2] sm:$0xff] %vm53_vm0, %v157_v40  ;;  %v843_v40 = vld [vmem:[%s911_s3] ss:$0 sm:$0xff]  ;;  %s568_s3 = sshll.u32 %s739_s2, 4  ;;  %s569_s3 = int_to_ptr.vmem [resolvable:$true] %s568_s3 }
  0xbb   :  { %v144_v43 = vpop.xlane.xlu1 %143  ;;  %v142_v44 = vpop.xlane.xlu0 %141  ;;  %s705_s22 = scalar_lea.vmem %s569_s3, 2048  ;;  %p710_p3 = scmp.lt.s32.totalorder %s569_s3, %s569_s3 }
  0xbc   :  { %v166_v45 = vadd.f32 %v144_v43, %v79_v41  ;;  %v165_v46 = vadd.f32 %v142_v44, %v78_v42  ;;  %p706_p2 = scmp.ne.s32.totalorder %s569_s3, %s705_s22  ;;  %p711_p4 = scmp.lt.s32.totalorder %s705_s22, %s705_s22 }
  0xbe   :  { %183 = vst.msk [vmem:[#allocation2 + $0x48] sm:$0xff] %vm53_vm0, %v166_v45  ;;  %182 = vst.msk [vmem:[#allocation2 + $0x40] sm:$0xff] %vm53_vm0, %v165_v46  ;;  %p712_p5 = por %p711_p4, %p710_p3 }
  0xbf   :  { %v146_v49 = vpop.xlane.xlu1 %145  ;;  %v130_v50 = vpop.xlane.xlu0 %129 }
  0xc0   :  { %v167_v51 = vadd.f32 %v146_v49, %v80_v47  ;;  %v159_v52 = vadd.f32 %v130_v50, %v72_v48  ;;  %p713_p6 = pnand %p712_p5, %p706_p2 }
  0xc1   :  { %v193_v53 = vld [vmem:[#allocation2] sm:$0xff]  ;;  %v194_v0 = vld [vmem:[#allocation2 + $0x8] sm:$0xff] }
  0xc2   :  { %184 = vst.msk [vmem:[#allocation2 + $0x50] sm:$0xff] %vm53_vm0, %v167_v51  ;;  %212 = vperm.xlu0 %659, %v193_v53   ;;  %176 = vst.msk [vmem:[#allocation2 + $0x10] sm:$0xff] %vm53_vm0, %v159_v52 }
  0xc3   :  { %v148_v56 = vpop.xlane.xlu1 %147  ;;  %v132_v57 = vpop.xlane.xlu0 %131 }
  0xc4   :  { %v168_v58 = vadd.f32 %v148_v56, %v81_v54  ;;  %v160_v59 = vadd.f32 %v132_v57, %v73_v55 }
  0xc5   :  { %v201_v60 = vld [vmem:[#allocation2 + $0x40] sm:$0xff]  ;;  %v202_v9 = vld [vmem:[#allocation2 + $0x48] sm:$0xff] }
  0xc6   :  { %185 = vst.msk [vmem:[#allocation2 + $0x58] sm:$0xff] %vm53_vm0, %v168_v58  ;;  %252 = vperm.xlu1 %660, %v201_v60   ;;  %177 = vst.msk [vmem:[#allocation2 + $0x18] sm:$0xff] %vm53_vm0, %v160_v59 }
  0xc7   :  { %v150_v63 = vpop.xlane.xlu1 %149  ;;  %v134_v1 = vpop.xlane.xlu0 %133 }
  0xc8   :  { %v169_v2 = vadd.f32 %v150_v63, %v82_v61  ;;  %v161_v3 = vadd.f32 %v134_v1, %v74_v62 }
  0xc9   :  { %v195_v17 = vld [vmem:[#allocation2 + $0x10] sm:$0xff] }
  0xca   :  { %186 = vst.msk [vmem:[#allocation2 + $0x60] sm:$0xff] %vm53_vm0, %v169_v2  ;;  %217 = vperm.xlu1 %660, %v194_v0   ;;  %178 = vst.msk [vmem:[#allocation2 + $0x20] sm:$0xff] %vm53_vm0, %v161_v3  ;;  %v203_v25 = vld [vmem:[#allocation2 + $0x50] sm:$0xff] }
  0xcb   :  { %v152_v8 = vpop.xlane.xlu1 %151  ;;  %v136_v10 = vpop.xlane.xlu0 %135 }
  0xcc   :  { %v170_v12 = vadd.f32 %v152_v8, %v83_v4  ;;  %v162_v13 = vadd.f32 %v136_v10, %v75_v5 }
  0xcd   :  { %v196_v30 = vld [vmem:[#allocation2 + $0x18] sm:$0xff] }
  0xce   :  { %187 = vst.msk [vmem:[#allocation2 + $0x68] sm:$0xff] %vm53_vm0, %v170_v12  ;;  %257 = vperm.xlu1 %660, %v202_v9   ;;  %179 = vst.msk [vmem:[#allocation2 + $0x28] sm:$0xff] %vm53_vm0, %v162_v13  ;;  %v204_v32 = vld [vmem:[#allocation2 + $0x58] sm:$0xff] }
  0xcf   :  { %v154_v16 = vpop.xlane.xlu1 %153  ;;  %v138_v18 = vpop.xlane.xlu0 %137 }
  0xd0   :  { %v171_v19 = vadd.f32 %v154_v16, %v84_v14  ;;  %v163_v20 = vadd.f32 %v138_v18, %v76_v15 }
  0xd1   :  { %v205_v21 = vld [vmem:[#allocation2 + $0x60] sm:$0xff] }
  0xd2   :  { %188 = vst.msk [vmem:[#allocation2 + $0x70] sm:$0xff] %vm53_vm0, %v171_v19  ;;  %222 = vperm.xlu1 %660, %v195_v17   ;;  %272 = vperm.xlu0 %659, %v205_v21   ;;  %180 = vst.msk [vmem:[#allocation2 + $0x30] sm:$0xff] %vm53_vm0, %v163_v20  ;;  %v197_v34 = vld [vmem:[#allocation2 + $0x20] sm:$0xff] }
  0xd3   :  { %v156_v24 = vpop.xlane.xlu1 %155  ;;  %v140_v26 = vpop.xlane.xlu0 %139 }
  0xd4   :  { %v172_v27 = vadd.f32 %v156_v24, %v85_v22  ;;  %v164_v28 = vadd.f32 %v140_v26, %v77_v23 }
  0xd5   :  { %v206_v29 = vld [vmem:[#allocation2 + $0x68] sm:$0xff] }
  0xd6   :  { %189 = vst.msk [vmem:[#allocation2 + $0x78] sm:$0xff] %vm53_vm0, %v172_v27  ;;  %262 = vperm.xlu1 %660, %v203_v25   ;;  %277 = vperm.xlu0 %659, %v206_v29   ;;  %181 = vst.msk [vmem:[#allocation2 + $0x38] sm:$0xff] %vm53_vm0, %v164_v28  ;;  %v198_v35 = vld [vmem:[#allocation2 + $0x28] sm:$0xff] }
  0xd9   :  { %v207_v31 = vld [vmem:[#allocation2 + $0x70] sm:$0xff] }
  0xda   :  { %227 = vperm.xlu1 %660, %v196_v30   ;;  %282 = vperm.xlu0 %659, %v207_v31   ;;  %v199_v36 = vld [vmem:[#allocation2 + $0x30] sm:$0xff] }
  0xdd   :  { %v208_v33 = vld [vmem:[#allocation2 + $0x78] sm:$0xff] }
  0xde   :  { %267 = vperm.xlu1 %660, %v204_v32   ;;  %287 = vperm.xlu0 %659, %v208_v33   ;;  %v200_v37 = vld [vmem:[#allocation2 + $0x38] sm:$0xff] }
  0xe2   :  { %232 = vperm.xlu1 %660, %v197_v34  }
  0xe6   :  { %237 = vperm.xlu1 %660, %v198_v35  }
  0xea   :  { %242 = vperm.xlu1 %660, %v199_v36  }
  0xee   :  { %247 = vperm.xlu1 %660, %v200_v37  }
 0x141   :  { %v213_v39 = vpop.permute.xlu0 %212 }
 0x142   :  { %v296_v41 = vmul.f32 %v838_v38, %v213_v39 }
 0x144   :  { %v319_v42 = vadd.f32 %v843_v40, %v296_v41 }
 0x145   :  { %v253_v43 = vpop.permute.xlu1 %252 }
 0x146   :  { %v304_v44 = vmul.f32 %v838_v38, %v253_v43  ;;  %v335_v45 = vmax.f32 %v319_v42, 0.0 }
 0x148   :  { %622 = vmatprep.mubr.msk.f32.mxu0 %vm353_vm1, %v335_v45  ;;  %v327_v46 = vadd.f32 %v843_v40, %v304_v44 }
 0x149   :  { %v218_v47 = vpop.permute.xlu1 %217 }
 0x14a   :  { %v297_v48 = vmul.f32 %v838_v38, %v218_v47  ;;  %v343_v49 = vmax.f32 %v327_v46, 0.0 }
 0x14c   :  { %v320_v50 = vadd.f32 %v843_v40, %v297_v48  ;;  %634 = vmatprep.mubr.msk.f32.mxu1 %vm353_vm1, %v343_v49 }
 0x14d   :  { %v258_v51 = vpop.permute.xlu1 %257 }
 0x14e   :  { %v336_v52 = vmax.f32 %v320_v50, 0.0  ;;  %v305_v53 = vmul.f32 %v838_v38, %v258_v51 }
 0x150   :  { %v328_v54 = vadd.f32 %v843_v40, %v305_v53  ;;  %623 = vmatmul.mubr.msk.f32.vlgmr.msra.gmra.mrb[0].mxu0 %vm353_vm1, %v336_v52 }
 0x151   :  { %v223_v55 = vpop.permute.xlu1 %222  ;;  %v273_v56 = vpop.permute.xlu0 %272 }
 0x152   :  { %v344_v57 = vmax.f32 %v328_v54, 0.0  ;;  %v298_v58 = vmul.f32 %v838_v38, %v223_v55  ;;  %v308_v1 = vmul.f32 %v838_v38, %v273_v56 }
 0x154   :  { %v321_v59 = vadd.f32 %v843_v40, %v298_v58  ;;  %635 = vmatmul.mubr.msk.f32.vlgmr.msra.gmra.mrb[0].mxu1 %vm353_vm1, %v344_v57  ;;  %v331_v7 = vadd.f32 %v843_v40, %v308_v1 }
 0x155   :  { %v263_v60 = vpop.permute.xlu1 %262  ;;  %v278_v61 = vpop.permute.xlu0 %277 }
 0x156   :  { %v337_v62 = vmax.f32 %v321_v59, 0.0  ;;  %v306_v63 = vmul.f32 %v838_v38, %v263_v60  ;;  %v309_v9 = vmul.f32 %v838_v38, %v278_v61  ;;  %v347_v15 = vmax.f32 %v331_v7, 0.0 }
 0x158   :  { %v329_v0 = vadd.f32 %v843_v40, %v306_v63  ;;  %625 = vmatprep.mubr.msk.f32.mxu0 %vm353_vm1, %v337_v62  ;;  %v332_v17 = vadd.f32 %v843_v40, %v309_v9 }
 0x159   :  { %v228_v2 = vpop.permute.xlu1 %227  ;;  %v283_v3 = vpop.permute.xlu0 %282 }
 0x15a   :  { %v345_v4 = vmax.f32 %v329_v0, 0.0  ;;  %v299_v5 = vmul.f32 %v838_v38, %v228_v2  ;;  %v310_v12 = vmul.f32 %v838_v38, %v283_v3  ;;  %v348_v24 = vmax.f32 %v332_v17, 0.0 }
 0x15c   :  { %v322_v6 = vadd.f32 %v843_v40, %v299_v5  ;;  %637 = vmatprep.mubr.msk.f32.mxu1 %vm353_vm1, %v345_v4  ;;  %v333_v21 = vadd.f32 %v843_v40, %v310_v12 }
 0x15d   :  { %v268_v8 = vpop.permute.xlu1 %267  ;;  %v288_v13 = vpop.permute.xlu0 %287 }
 0x15e   :  { %v338_v10 = vmax.f32 %v322_v6, 0.0  ;;  %v307_v11 = vmul.f32 %v838_v38, %v268_v8  ;;  %v311_v19 = vmul.f32 %v838_v38, %v288_v13  ;;  %v349_v28 = vmax.f32 %v333_v21, 0.0 }
 0x160   :  { %v330_v14 = vadd.f32 %v843_v40, %v307_v11  ;;  %626 = vmatmul.mubr.msk.f32.gmra.mrb[2].mxu0 %vm353_vm1, %v338_v10  ;;  %v334_v25 = vadd.f32 %v843_v40, %v311_v19 }
 0x161   :  { %v233_v16 = vpop.permute.xlu1 %232 }
 0x162   :  { %v346_v18 = vmax.f32 %v330_v14, 0.0  ;;  %v300_v20 = vmul.f32 %v838_v38, %v233_v16  ;;  %v350_v31 = vmax.f32 %v334_v25, 0.0 }
 0x164   :  { %v323_v22 = vadd.f32 %v843_v40, %v300_v20  ;;  %638 = vmatmul.mubr.msk.f32.gmra.mrb[2].mxu1 %vm353_vm1, %v346_v18 }
 0x165   :  { %v238_v23 = vpop.permute.xlu1 %237  ;;  %640 = vmatprep.mubr.msk.f32.mxu1 %vm353_vm1, %v347_v15 }
 0x166   :  { %v339_v26 = vmax.f32 %v323_v22, 0.0  ;;  %v301_v27 = vmul.f32 %v838_v38, %v238_v23 }
 0x168   :  { %v324_v29 = vadd.f32 %v843_v40, %v301_v27  ;;  %628 = vmatprep.mubr.msk.f32.mxu0 %vm353_vm1, %v339_v26  ;;  %641 = vmatmul.mubr.msk.f32.gmra.mrb[4].mxu1 %vm353_vm1, %v348_v24 }
 0x169   :  { %v243_v30 = vpop.permute.xlu1 %242  ;;  %643 = vmatprep.mubr.msk.f32.mxu1 %vm353_vm1, %v349_v28 }
 0x16a   :  { %v340_v32 = vmax.f32 %v324_v29, 0.0  ;;  %v302_v33 = vmul.f32 %v838_v38, %v243_v30 }
 0x16c   :  { %v325_v34 = vadd.f32 %v843_v40, %v302_v33  ;;  %629 = vmatmul.mubr.msk.f32.gmra.mrb[4].mxu0 %vm353_vm1, %v340_v32  ;;  %644 = vmatmul.mubr.msk.f32.gmra.mrb[6].mxu1 %vm353_vm1, %v350_v31 }
 0x16d   :  { %v248_v35 = vpop.permute.xlu1 %247 }
 0x16e   :  { %v341_v36 = vmax.f32 %v325_v34, 0.0  ;;  %v303_v37 = vmul.f32 %v838_v38, %v248_v35 }
 0x170   :  { %v326_v39 = vadd.f32 %v843_v40, %v303_v37  ;;  %631 = vmatprep.mubr.msk.f32.mxu0 %vm353_vm1, %v341_v36 }
 0x172   :  { %v342_v41 = vmax.f32 %v326_v39, 0.0 }
 0x174   :  { %632 = vmatmul.mubr.msk.f32.gmra.mrb[6].mxu0 %vm353_vm1, %v342_v41 }
 0x223   :  { %v624_v42 = vpop.f32.mrb[0].mxu0 }
 0x224   :  { %548 = vst [vmem:[#allocation8 + $0x8] sm:$0xff] %v624_v42  ;;  %v468_v43 = vpop.f32.mrb[1].mxu0 }
 0x225   :  { %547 = vst [vmem:[#allocation8] sm:$0xff] %v468_v43 }
 0x227   :  { %v636_v44 = vpop.f32.mrb[0].mxu1 }
 0x228   :  { %556 = vst [vmem:[#allocation8 + $0x48] sm:$0xff] %v636_v44  ;;  %v508_v45 = vpop.f32.mrb[1].mxu1 }
 0x229   :  { %555 = vst [vmem:[#allocation8 + $0x40] sm:$0xff] %v508_v45 }
 0x233   :  { %v627_v46 = vpop.f32.mrb[2].mxu0 }
 0x234   :  { %550 = vst [vmem:[#allocation8 + $0x18] sm:$0xff] %v627_v46  ;;  %v478_v47 = vpop.f32.mrb[3].mxu0 }
 0x235   :  { %549 = vst [vmem:[#allocation8 + $0x10] sm:$0xff] %v478_v47 }
 0x237   :  { %v639_v38 = vpop.f32.mrb[2].mxu1 }
 0x238   :  { %558 = vst [vmem:[#allocation8 + $0x58] sm:$0xff] %v639_v38  ;;  %v518_v40 = vpop.f32.mrb[3].mxu1 }
 0x239   :  { %557 = vst [vmem:[#allocation8 + $0x50] sm:$0xff] %v518_v40 }
 0x23b   :  { %v642_v48 = vpop.f32.mrb[4].mxu1 }
 0x23c   :  { %560 = vst [vmem:[#allocation8 + $0x68] sm:$0xff] %v642_v48  ;;  %v528_v49 = vpop.f32.mrb[5].mxu1 }
 0x23d   :  { %559 = vst [vmem:[#allocation8 + $0x60] sm:$0xff] %v528_v49 }
 0x23f   :  { %v630_v50 = vpop.f32.mrb[4].mxu0  ;;  %v645_v51 = vpop.f32.mrb[6].mxu1 }
 0x240   :  { %552 = vst [vmem:[#allocation8 + $0x28] sm:$0xff] %v630_v50  ;;  %562 = vst [vmem:[#allocation8 + $0x78] sm:$0xff] %v645_v51  ;;  %v488_v52 = vpop.f32.mrb[5].mxu0  ;;  %v538_v53 = vpop.f32.mrb[7].mxu1 }
 0x241   :  { %551 = vst [vmem:[#allocation8 + $0x20] sm:$0xff] %v488_v52  ;;  %561 = vst [vmem:[#allocation8 + $0x70] sm:$0xff] %v538_v53 }
 0x247   :  { %v633_v54 = vpop.f32.mrb[6].mxu0 }
 0x248   :  { %554 = vst [vmem:[#allocation8 + $0x38] sm:$0xff] %v633_v54  ;;  %v498_v55 = vpop.f32.mrb[7].mxu0 }
 0x249   :  { %553 = vst [vmem:[#allocation8 + $0x30] sm:$0xff] %v498_v55 }
 0x24a   :  { %716 = shalt.err (!%p713_p6)
}
 0x24b   :  { %s717_s25 = scalar_lea.hbm %s913_s5, 2048 }
 0x24c   :  { %p718_p7 = scmp.ne.s32.totalorder %s913_s5, %s717_s25  ;;  %p721_p8 = scmp.lt.u32.totalorder %s717_s25, %s913_s5 }
 0x24e   :  { %p723_p9 = pnand %p721_p8, %p718_p7 }
 0x250   :  { %726 = shalt.err (!%p723_p9)
}
 0x251   :  { %574 = dma.vmem_to_hbm [thread:$0]  %s569_s3, 2048, %s913_s5, [#allocation5], %s734_s28, %s734_s28, %s735_s29  }
 0x252   :  { %731 = dma.done.wait [#allocation5], 2048  }
 0x253   :  { %732 = vsyncadd [#allocation5], 4294965248 }
 0x254   :  { %578 = vsyncpa [#allocation4], 1 }
 0x255   :  { %579 = vsyncpa [#allocation7], 1 }
 0x256   :  { %580 = vsyncpa [#allocation5], 1 }

</bundles_post_ra>
